<compile_context>
chip_gen: v7x
topology: tpu7x:2x2x1
jax: 0.10.0
libtpu: 0.0.40
codegen_flags: <defaults>
</compile_context>

<pallas_src>
import jax
import jax.numpy as jnp
from jax.experimental import pallas as pl
from jax.experimental.pallas import tpu as pltpu

_LANES = 128


def _grayscale_mean_kernel(x_ref, o_ref):
    # x_ref: (Bt, C, S, 128) sublane/lane-dense tile in VMEM; o_ref: (Bt, S, 128).
    C = x_ref.shape[1]
    # Unrolled channel sum of full-density slabs, accumulated in f32, then a
    # single 1/C scale (VPU-only; no XLU reductions).
    acc = x_ref[:, 0, :, :].astype(jnp.float32)
    for c in range(1, C):
        acc = acc + x_ref[:, c, :, :].astype(jnp.float32)
    o_ref[...] = (acc * jnp.float32(1.0 / C)).astype(o_ref.dtype)


def _dim_semantics(n_batch_blocks, n_row_blocks):
    """'parallel' everywhere; promote the biggest axis to CORE_PARALLEL on v7x."""
    try:
        kind = jax.devices()[0].device_kind.lower()
        is_v7 = "v7" in kind  # 2 TensorCores/chip; v5e/v6e have 1.
    except Exception:
        is_v7 = False
    if is_v7:
        if n_batch_blocks > 1:
            return (pltpu.CORE_PARALLEL, pltpu.PARALLEL)
        if n_row_blocks > 1:
            return (pltpu.PARALLEL, pltpu.CORE_PARALLEL)
    return ("parallel", "parallel")


def grayscale_unweighted(img, *, target_block_bytes=2 * 1024 * 1024):
    """Pallas equivalent of GrayscaleUnweighted.forward (unweighted channel mean).

    Args:
        img: jnp array of shape [B, C, H, W] (NCHW, like PyTorch), float dtype.
        target_block_bytes: approx. input bytes streamed per grid step.
    Returns:
        jnp array of shape [B, 1, H, W], same dtype as img.
    """
    # TODO(synk): integer inputs are not supported (torch.mean raises on ints);
    # this kernel assumes floating-point images, as used in zoobot transforms.
    assert jnp.issubdtype(img.dtype, jnp.floating), "float inputs only"
    B, C, H, W = img.shape
    HW = H * W
    itemsize = jnp.dtype(img.dtype).itemsize
    # Sublane granule: 8 rows/vreg for f32, 16 for bf16, 32 for 8-bit types.
    granule = 8 * max(1, 4 // itemsize)

    # --- sublane-dense view: (B, C, HW) -> (B, C, R, 128) (pad only if ragged) ---
    pad = (-HW) % _LANES
    x = img.reshape(B, C, HW)
    if pad:
        # TODO(synk): jnp.pad copies the input once; unavoidable when H*W is not
        # a multiple of 128 (lane alignment needed for the dense reshape).
        x = jnp.pad(x, ((0, 0), (0, 0), (0, pad)))
    HWp = HW + pad
    R = HWp // _LANES
    x = x.reshape(B, C, R, _LANES)

    # --- pick (Bt, S) so each grid step streams ~target_block_bytes of input ---
    row_bytes = C * _LANES * itemsize               # bytes of one (C, 1, 128) row-slab
    rows_target = max(granule, target_block_bytes // row_bytes)
    if R <= rows_target:
        # Whole image per step; batch several images together if they are small.
        S = R                                       # full extent -> always legal block
        per_image = R * row_bytes
        want = min(B, max(1, target_block_bytes // max(per_image, 1)))
        Bt = max(d for d in range(1, int(want) + 1) if B % d == 0)
    else:
        # Tile the row axis with balanced, granule-aligned blocks (no tiny tails).
        Bt = 1
        n_blocks = pl.cdiv(R, rows_target)
        S = pl.cdiv(pl.cdiv(R, n_blocks), granule) * granule
        S = min(S, R)

    n_batch_blocks = B // Bt
    n_row_blocks = pl.cdiv(R, S)
    grid = (n_batch_blocks, n_row_blocks)

    out = pl.pallas_call(
        _grayscale_mean_kernel,
        out_shape=jax.ShapeDtypeStruct((B, 1, R, _LANES), img.dtype),
        grid_spec=pltpu.PrefetchScalarGridSpec(
            num_scalar_prefetch=0,
            grid=grid,
            in_specs=[
                pl.BlockSpec((Bt, C, S, _LANES), lambda b, r: (b, 0, r, 0)),
            ],
            # Kept-channel dim squeezed -> kernel writes a dense (Bt, S, 128) slab.
            out_specs=pl.BlockSpec((Bt, None, S, _LANES), lambda b, r: (b, 0, r, 0)),
        ),
        compiler_params=pltpu.CompilerParams(
            dimension_semantics=_dim_semantics(n_batch_blocks, n_row_blocks),
        ),
    )(x)

    out = out.reshape(B, 1, HWp)
    if pad:
        out = out[:, :, :HW]
    return out.reshape(B, 1, H, W)


if __name__ == "__main__":
    key = jax.random.PRNGKey(0)

    # Case 1: small RGB image, f32. HW=256 (lane-aligned), whole images per step.
    x1 = jax.random.normal(key, (2, 3, 16, 16), dtype=jnp.float32)
    o1 = jax.block_until_ready(grayscale_unweighted(x1))
    r1 = jnp.mean(x1, axis=-3, keepdims=True)
    assert o1.shape == (2, 1, 16, 16), o1.shape
    assert o1.dtype == x1.dtype
    assert jnp.allclose(o1, r1, atol=1e-6, rtol=1e-6)

    # Case 2: HW=400 not a multiple of 128 -> exercises the lane-pad + slice path.
    x2 = jax.random.normal(jax.random.PRNGKey(0), (2, 3, 20, 20), dtype=jnp.float32)
    o2 = jax.block_until_ready(grayscale_unweighted(x2))
    r2 = jnp.mean(x2, axis=-3, keepdims=True)
    assert o2.shape == (2, 1, 20, 20), o2.shape
    assert jnp.allclose(o2, r2, atol=1e-6, rtol=1e-6)

    # Case 3: bfloat16 input (f32 accumulate in-kernel, cast back to bf16).
    x3 = x1.astype(jnp.bfloat16)
    o3 = jax.block_until_ready(grayscale_unweighted(x3))
    r3 = jnp.mean(x3.astype(jnp.float32), axis=-3, keepdims=True).astype(jnp.bfloat16)
    assert o3.dtype == jnp.bfloat16
    assert jnp.allclose(o3.astype(jnp.float32), r3.astype(jnp.float32),
                        atol=2e-2, rtol=2e-2)

    # Case 4: force multi row-block tiling (small target) -> R=32, S=8, grid (2, 4).
    x4 = jax.random.normal(jax.random.PRNGKey(1), (2, 3, 64, 64), dtype=jnp.float32)
    o4 = jax.block_until_ready(grayscale_unweighted(x4, target_block_bytes=4096))
    r4 = jnp.mean(x4, axis=-3, keepdims=True)
    assert jnp.allclose(o4, r4, atol=1e-6, rtol=1e-6)

    # Case 5: padded + ragged last row-block (R=11, S=8 -> masked tail block).
    x5 = jax.random.normal(jax.random.PRNGKey(2), (1, 3, 36, 36), dtype=jnp.float32)
    o5 = jax.block_until_ready(grayscale_unweighted(x5, target_block_bytes=4096))
    r5 = jnp.mean(x5, axis=-3, keepdims=True)
    assert jnp.allclose(o5, r5, atol=1e-6, rtol=1e-6)

    # Case 6: multiple small images batched per grid step (Bt=2, grid (2, 1)).
    x6 = jax.random.normal(jax.random.PRNGKey(3), (4, 3, 16, 16), dtype=jnp.float32)
    o6 = jax.block_until_ready(grayscale_unweighted(x6, target_block_bytes=8192))
    r6 = jnp.mean(x6, axis=-3, keepdims=True)
    assert jnp.allclose(o6, r6, atol=1e-6, rtol=1e-6)

    print("KERNEL_OK")
</pallas_src>

<mosaic_0001>
module attributes {stable_mosaic.version = 11 : i64} {
  func.func @_grayscale_mean_kernel(%arg0: i32, %arg1: i32, %arg2: memref<2x3x2x128xf32, #tpu.memory_space<vmem>>, %arg3: memref<2x1x2x128xf32, #tpu.memory_space<vmem>>) attributes {dimension_semantics = [#tpu.dimension_semantics<parallel>, #tpu.dimension_semantics<parallel>], iteration_bounds = array<i64: 1, 1>, scalar_prefetch = 0 : i64, scratch_operands = 0 : i64, tpu.core_type = #tpu.core_type<tc>, window_params = [{transform_indices = @transform_0, window_bounds = array<i64: 2, 3, 2, 128>}, {transform_indices = @transform_1, window_bounds = array<i64: 2, 1, 2, 128>}]} {
    %c0 = arith.constant 0 : index
    %c0_0 = arith.constant 0 : index
    %c0_1 = arith.constant 0 : index
    %c0_2 = arith.constant 0 : index
    %0 = vector.load %arg2[%c0, %c0_0, %c0_1, %c0_2] : memref<2x3x2x128xf32, #tpu.memory_space<vmem>>, vector<2x1x2x128xf32>
    %1 = vector.shape_cast %0 : vector<2x1x2x128xf32> to vector<2x2x128xf32>
    %c0_3 = arith.constant 0 : index
    %c1 = arith.constant 1 : index
    %c0_4 = arith.constant 0 : index
    %c0_5 = arith.constant 0 : index
    %2 = vector.load %arg2[%c0_3, %c1, %c0_4, %c0_5] : memref<2x3x2x128xf32, #tpu.memory_space<vmem>>, vector<2x1x2x128xf32>
    %3 = vector.shape_cast %2 : vector<2x1x2x128xf32> to vector<2x2x128xf32>
    %4 = arith.addf %1, %3 : vector<2x2x128xf32>
    %c0_6 = arith.constant 0 : index
    %c2 = arith.constant 2 : index
    %c0_7 = arith.constant 0 : index
    %c0_8 = arith.constant 0 : index
    %5 = vector.load %arg2[%c0_6, %c2, %c0_7, %c0_8] : memref<2x3x2x128xf32, #tpu.memory_space<vmem>>, vector<2x1x2x128xf32>
    %6 = vector.shape_cast %5 : vector<2x1x2x128xf32> to vector<2x2x128xf32>
    %7 = arith.addf %4, %6 : vector<2x2x128xf32>
    %cst = arith.constant 0.333333343 : f32
    %8 = vector.broadcast %cst : f32 to vector<2x2x128xf32>
    %9 = arith.mulf %7, %8 : vector<2x2x128xf32>
    %c0_9 = arith.constant 0 : index
    %c0_10 = arith.constant 0 : index
    %c0_11 = arith.constant 0 : index
    %c0_12 = arith.constant 0 : index
    %10 = vector.load %arg3[%c0_9, %c0_10, %c0_11, %c0_12] : memref<2x1x2x128xf32, #tpu.memory_space<vmem>>, vector<2x1x2x128xf32>
    %11 = vector.shape_cast %10 : vector<2x1x2x128xf32> to vector<2x2x128xf32>
    %12 = vector.shape_cast %9 : vector<2x2x128xf32> to vector<2x1x2x128xf32>
    tpu.vector_store %arg3[%c0_9, %c0_10, %c0_11, %c0_12], %12 {strides = array<i32>} : memref<2x1x2x128xf32, #tpu.memory_space<vmem>>, vector<2x1x2x128xf32>,
    return
  }
  func.func @transform_0(%arg0: i32, %arg1: i32) -> (i32, i32, i32, i32) {
    %c0_i32 = arith.constant 0 : i32
    %c0_i32_0 = arith.constant 0 : i32
    %c0_i32_1 = arith.constant 0 : i32
    return %arg0, %c0_i32, %arg1, %c0_i32_0 : i32, i32, i32, i32
  }
  func.func @transform_1(%arg0: i32, %arg1: i32) -> (i32, i32, i32, i32) {
    %c0_i32 = arith.constant 0 : i32
    %c0_i32_0 = arith.constant 0 : i32
    %c0_i32_1 = arith.constant 0 : i32
    return %arg0, %c0_i32, %arg1, %c0_i32_0 : i32, i32, i32, i32
  }
}

</mosaic_0001>

<bundles_post_ra>
// kernel: tpu_custom_call.1
= control target key start
LH: loop header
LB: loop body
LE: loop exit
PB: predicated region body
PF: predicated region fallthrough
CT: control target
= control target key end

     0   :  { %6 = vsyncpa [#allocation3], 0  ;;  %s152_s0 = inlined_call_operand.hbm [shape: f32[2,3,2,128], index: 0, kind: input, shape index: {}]   ;;  %s153_s1 = inlined_call_operand.hbm [shape: f32[2,1,2,128], index: 1, kind: output, shape index: {}]  }
   0x1   :  { %7 = vsyncpa [#allocation4], 0  ;;  %s108_s6 = smov [#allocation2]   ;;  %s60_s10 = scalar_lea.hbm %s152_s0, 192 }
   0x2   :  { %s13_s7 = sshll.u32 %s108_s6, 4  ;;  %p61_p0 = scmp.ne.s32.totalorder %s152_s0, %s60_s10  ;;  %s14_s7 = int_to_ptr.vmem [resolvable:$true] %s13_s7 }
   0x3   :  { %p64_p1 = scmp.lt.u32.totalorder %s60_s10, %s152_s0 }
   0x5   :  { %p66_p2 = pnand %p64_p1, %p61_p0 }
   0x7   :  { %69 = shalt.err (!%p66_p2)
}
   0x8   :  { %s70_s15 = scalar_lea.vmem %s14_s7, 192  ;;  %p75_p4 = scmp.lt.s32.totalorder %s14_s7, %s14_s7 }
   0x9   :  { %p71_p3 = scmp.ne.s32.totalorder %s14_s7, %s70_s15  ;;  %p76_p5 = scmp.lt.s32.totalorder %s70_s15, %s70_s15 }
   0xb   :  { %p77_p6 = por %p76_p5, %p75_p4 }
   0xd   :  { %p78_p7 = pnand %p77_p6, %p71_p3 }
   0xf   :  { %81 = shalt.err (!%p78_p7)
}
  0x10   :  { %s109_s16 = smov 32   ;;  %s110_s17 = smov 2  }
  0x11   :  { %19 = dma.hbm_to_vmem [thread:$0]  %s152_s0, 192, %s14_s7, [#allocation3], %s109_s16, %s109_s16, %s110_s17  }
  0x12   :  { %104 = dma.done.wait [#allocation3], 192  }
  0x13   :  { %105 = vsyncadd [#allocation3], 4294967104  ;;  %v23_v0 = vld [vmem:[#allocation2] sm:$0x3]  ;;  %v26_v1 = vld [vmem:[#allocation2 + $0x2] sm:$0x3] }
  0x14   :  { %v31_v2 = vld [vmem:[#allocation2 + $0x4] sm:$0x3]  ;;  %v28_v3 = vadd.f32 %v26_v1, %v23_v0  ;;  %v24_v4 = vld [vmem:[#allocation2 + $0x6] sm:$0x3]  ;;  %v27_v5 = vld [vmem:[#allocation2 + $0x8] sm:$0x3] }
  0x15   :  { %v32_v6 = vld [vmem:[#allocation2 + $0xa] sm:$0x3]  ;;  %v29_v7 = vadd.f32 %v27_v5, %v24_v4  ;;  %s111_s20 = smov [#allocation5]  }
  0x16   :  { %v33_v8 = vadd.f32 %v31_v2, %v28_v3  ;;  %s44_s21 = sshll.u32 %s111_s20, 4  ;;  %s45_s21 = int_to_ptr.vmem [resolvable:$true] %s44_s21 }
  0x17   :  { %v34_v9 = vadd.f32 %v32_v6, %v29_v7  ;;  %s82_s0 = scalar_lea.vmem %s45_s21, 64  ;;  %p87_p9 = scmp.lt.s32.totalorder %s45_s21, %s45_s21 }
  0x18   :  { %v35_v10 = vmul.f32 0.33333334, %v33_v8  ;;  %p83_p8 = scmp.ne.s32.totalorder %s45_s21, %s82_s0  ;;  %p88_p10 = scmp.lt.s32.totalorder %s82_s0, %s82_s0 }
  0x19   :  { %v36_v11 = vmul.f32 0.33333334, %v34_v9 }
  0x1a   :  { %37 = vst [vmem:[#allocation5] sm:$0x3] %v35_v10  ;;  %p89_p11 = por %p88_p10, %p87_p9 }
  0x1b   :  { %38 = vst [vmem:[#allocation5 + $0x2] sm:$0x3] %v36_v11 }
  0x1c   :  { %p90_p12 = pnand %p89_p11, %p83_p8 }
  0x1e   :  { %93 = shalt.err (!%p90_p12)
}
  0x1f   :  { %s94_s24 = scalar_lea.hbm %s153_s1, 64 }
  0x20   :  { %p95_p13 = scmp.ne.s32.totalorder %s153_s1, %s94_s24  ;;  %p98_p0 = scmp.lt.u32.totalorder %s94_s24, %s153_s1 }
  0x22   :  { %p100_p1 = pnand %p98_p0, %p95_p13 }
  0x24   :  { %103 = shalt.err (!%p100_p1)
}
  0x25   :  { %50 = dma.vmem_to_hbm [thread:$0]  %s45_s21, 64, %s153_s1, [#allocation4], %s109_s16, %s109_s16, %s110_s17  }
  0x26   :  { %106 = dma.done.wait [#allocation4], 64  }
  0x27   :  { %107 = vsyncadd [#allocation4], 4294967232 }
  0x28   :  { %54 = vsyncpa [#allocation3], 1 }
  0x29   :  { %55 = vsyncpa [#allocation4], 1 }

</bundles_post_ra>
